<compile_context>
chip_gen: v6e
topology: v6e:2x2x1
jax: 0.10.0
libtpu: 0.0.40
codegen_flags: <defaults>
</compile_context>

<pallas_src>
import jax
import jax.numpy as jnp
from jax.experimental import pallas as pl
from jax.experimental.pallas import tpu as pltpu


def _round_up(a: int, m: int) -> int:
    return (a + m - 1) // m * m


def _block_diag2(w):
    """[[w, 0], [0, w]] : (I, O) -> (2I, 2O)."""
    z = jnp.zeros_like(w)
    return jnp.concatenate(
        [jnp.concatenate([w, z], axis=1),
         jnp.concatenate([z, w], axis=1)], axis=0)


def pack_params(params):
    """One-time packing of f32 (in, out) weights / (1, out) biases into the
    block-diagonal bf16 layout the kernel consumes.  Call once at init."""
    return {
        "w1": _block_diag2(params["w1"]).astype(jnp.bfloat16),
        "b1": jnp.concatenate([params["b1"]] * 2, axis=1).astype(jnp.bfloat16),
        "w2": _block_diag2(params["w2"]).astype(jnp.bfloat16),
        "b2": jnp.concatenate([params["b2"]] * 2, axis=1).astype(jnp.bfloat16),
        "w3": _block_diag2(params["w3"]).astype(jnp.bfloat16),
        "b3": jnp.concatenate([params["b3"]] * 2, axis=1).astype(jnp.bfloat16),
    }


def user_tower_kernel(x_ref, w1_ref, b1_ref, w2_ref, b2_ref, w3_ref, b3_ref,
                      o_ref):
    """Fused, packed 3-layer MLP with ReLU.

    x_ref : (TS, 128)  bf16  two logical 64-d rows per slab row
    w1    : (128, 256) bf16  block-diag([W1, W1]),  b1 : (1, 256) bf16
    w2    : (256, 256) bf16  block-diag([W2, W2]),  b2 : (1, 256) bf16
    w3    : (256, 128) bf16  block-diag([W3, W3]),  b3 : (1, 128) bf16
    o_ref : (TS, 128)  bf16  two logical 64-d outputs per slab row

    MXU matmuls accumulate in f32; bias-add / ReLU epilogue runs in bf16.
    """
    h = jnp.dot(x_ref[...], w1_ref[...], preferred_element_type=jnp.float32)
    h = jnp.maximum(h.astype(jnp.bfloat16) + b1_ref[...], 0.0)

    h = jnp.dot(h, w2_ref[...], preferred_element_type=jnp.float32)
    h = jnp.maximum(h.astype(jnp.bfloat16) + b2_ref[...], 0.0)

    h = jnp.dot(h, w3_ref[...], preferred_element_type=jnp.float32)
    h = jnp.maximum(h.astype(jnp.bfloat16) + b3_ref[...], 0.0)

    o_ref[...] = h.astype(o_ref.dtype)


def user_tower(x, packed, *, tile_rows=4096):
    """x: (B, 64) float32 or bfloat16.  packed: output of pack_params().
    Returns (B, 64) bfloat16."""
    B, D_in = x.shape
    w1p, b1p = packed["w1"], packed["b1"]
    w2p, b2p = packed["w2"], packed["b2"]
    w3p, b3p = packed["w3"], packed["b3"]
    D_in_p, D_h_p = w1p.shape
    D_out_p = w3p.shape[1]
    assert D_in_p == 2 * D_in
    D_out = D_out_p // 2

    # ---- step-count-first tiling ----
    # >= 4 grid steps when the batch permits (2 pipelined steps per v7x TC);
    # tile is a multiple of 16 logical rows (8 slab sublanes); batch padding is
    # bounded by one tile.
    n_steps = pl.cdiv(B, tile_rows)
    if B >= 4 * 16:
        n_steps = max(n_steps, 4)
    tr = _round_up(pl.cdiv(B, n_steps), 16)
    n_steps = pl.cdiv(B, tr)
    B_pad = n_steps * tr
    ts = tr // 2  # packed (slab) rows per grid step

    # bf16 at the HBM boundary; the cast (needed anyway), the <=one-tile pad
    # and the row-pack reshape fuse into a single copy under jit.
    xb = x.astype(jnp.bfloat16)
    if B_pad != B:
        xb = jnp.pad(xb, ((0, B_pad - B), (0, 0)))
    xp = xb.reshape(B_pad // 2, D_in_p)

    full = lambda shape: pl.BlockSpec(shape, lambda i: (0, 0))  # resident block

    outp = pl.pallas_call(
        user_tower_kernel,
        out_shape=jax.ShapeDtypeStruct((B_pad // 2, D_out_p), jnp.bfloat16),
        grid_spec=pltpu.PrefetchScalarGridSpec(
            num_scalar_prefetch=0,
            grid=(n_steps,),
            in_specs=[
                pl.BlockSpec((ts, D_in_p), lambda i: (i, 0)),   # packed x
                full((D_in_p, D_h_p)),                          # w1 (bf16)
                full((1, D_h_p)),                               # b1 (bf16)
                full((D_h_p, D_h_p)),                           # w2 (bf16)
                full((1, D_h_p)),                               # b2 (bf16)
                full((D_h_p, D_out_p)),                         # w3 (bf16)
                full((1, D_out_p)),                             # b3 (bf16)
            ],
            out_specs=pl.BlockSpec((ts, D_out_p), lambda i: (i, 0)),
        ),
        compiler_params=pltpu.CompilerParams(
            dimension_semantics=("parallel",)),
    )(xp, w1p, b1p, w2p, b2p, w3p, b3p)

    # Unpack: slab row i holds logical rows 2i and 2i+1.  Drop batch padding.
    return outp.reshape(B_pad, D_out)[:B]


def init_params(key, input_dim=64, hidden_dim=128, output_dim=64,
                dtype=jnp.float32):
    """Shape-compatible init with the PyTorch module (Xavier-uniform weights,
    nn.Linear-default uniform biases).  Weights stored as (in, out)."""
    ks = jax.random.split(key, 6)

    def xavier(k, fan_in, fan_out):
        bound = jnp.sqrt(6.0 / (fan_in + fan_out))
        return jax.random.uniform(k, (fan_in, fan_out), dtype,
                                  minval=-bound, maxval=bound)

    def bias(k, fan_in, fan_out):
        bound = 1.0 / jnp.sqrt(fan_in)
        return jax.random.uniform(k, (1, fan_out), dtype,
                                  minval=-bound, maxval=bound)

    return {
        "w1": xavier(ks[0], input_dim, hidden_dim),
        "b1": bias(ks[1], input_dim, hidden_dim),
        "w2": xavier(ks[2], hidden_dim, hidden_dim),
        "b2": bias(ks[3], hidden_dim, hidden_dim),
        "w3": xavier(ks[4], hidden_dim, output_dim),
        "b3": bias(ks[5], hidden_dim, output_dim),
    }


def user_tower_ref(x, p):
    """Pure-JAX f32 reference of UserTower.forward for verification."""
    h = jnp.maximum(x @ p["w1"] + p["b1"], 0.0)
    h = jnp.maximum(h @ p["w2"] + p["b2"], 0.0)
    h = jnp.maximum(h @ p["w3"] + p["b3"], 0.0)
    return h


if __name__ == "__main__":
    key = jax.random.PRNGKey(0)
    k_x, k_p = jax.random.split(key)

    # Small, non-multiple batch: exercises padding, the >=4-step grid path,
    # and the row-pair packing.
    B, D_in = 200, 64
    x = jax.random.normal(k_x, (B, D_in), dtype=jnp.float32)
    params = init_params(k_p)

    packed = pack_params(params)          # one-time packing, out of hot path
    fwd = jax.jit(user_tower, static_argnames=("tile_rows",))

    out = jax.block_until_ready(fwd(x, packed))
    ref = user_tower_ref(x, params)

    assert out.shape == (B, 64)
    assert out.dtype == jnp.bfloat16
    # bf16 end-to-end (MXU operands, epilogue, HBM I/O) with f32 accumulation
    # -> loosened tolerance vs the f32 reference.
    err = float(jnp.max(jnp.abs(out.astype(jnp.float32) - ref)))
    assert jnp.allclose(out.astype(jnp.float32), ref, atol=1e-1, rtol=5e-2), err

    print("KERNEL_OK")
</pallas_src>

<mosaic_0001>
module attributes {stable_mosaic.version = 11 : i64} {
  func.func @user_tower_kernel(%arg0: i32, %arg1: memref<32x128xbf16, #tpu.memory_space<vmem>>, %arg2: memref<128x256xbf16, #tpu.memory_space<vmem>>, %arg3: memref<1x256xbf16, #tpu.memory_space<vmem>>, %arg4: memref<256x256xbf16, #tpu.memory_space<vmem>>, %arg5: memref<1x256xbf16, #tpu.memory_space<vmem>>, %arg6: memref<256x128xbf16, #tpu.memory_space<vmem>>, %arg7: memref<1x128xbf16, #tpu.memory_space<vmem>>, %arg8: memref<32x128xbf16, #tpu.memory_space<vmem>>) attributes {dimension_semantics = [#tpu.dimension_semantics<parallel>], iteration_bounds = array<i64: 4>, scalar_prefetch = 0 : i64, scratch_operands = 0 : i64, tpu.core_type = #tpu.core_type<tc>, window_params = [{transform_indices = @transform_0, window_bounds = array<i64: 32, 128>}, {pipeline_mode = #tpu.pipeline_mode<synchronous>, transform_indices = @transform_1, window_bounds = array<i64: 128, 256>}, {pipeline_mode = #tpu.pipeline_mode<synchronous>, transform_indices = @transform_2, window_bounds = array<i64: 1, 256>}, {pipeline_mode = #tpu.pipeline_mode<synchronous>, transform_indices = @transform_3, window_bounds = array<i64: 256, 256>}, {pipeline_mode = #tpu.pipeline_mode<synchronous>, transform_indices = @transform_4, window_bounds = array<i64: 1, 256>}, {pipeline_mode = #tpu.pipeline_mode<synchronous>, transform_indices = @transform_5, window_bounds = array<i64: 256, 128>}, {pipeline_mode = #tpu.pipeline_mode<synchronous>, transform_indices = @transform_6, window_bounds = array<i64: 1, 128>}, {transform_indices = @transform_7, window_bounds = array<i64: 32, 128>}]} {
    %c0 = arith.constant 0 : index
    %c0_0 = arith.constant 0 : index
    %0 = vector.load %arg1[%c0, %c0_0] : memref<32x128xbf16, #tpu.memory_space<vmem>>, vector<32x128xbf16>
    %c0_1 = arith.constant 0 : index
    %c0_2 = arith.constant 0 : index
    %1 = vector.load %arg2[%c0_1, %c0_2] : memref<128x256xbf16, #tpu.memory_space<vmem>>, vector<128x256xbf16>
    %cst = arith.constant dense<0.000000e+00> : vector<32x256xf32>
    %2 = tpu.matmul %0, %1, %cst {dimension_numbers = #tpu.dot_dimension_numbers<[1], [0], [0], [1], [0, 0, 1, 1], [], []>} : vector<32x128xbf16>, vector<128x256xbf16>, vector<32x256xf32> -> vector<32x256xf32>
    %3 = arith.truncf %2 : vector<32x256xf32> to vector<32x256xbf16>
    %c0_3 = arith.constant 0 : index
    %c0_4 = arith.constant 0 : index
    %4 = vector.load %arg3[%c0_3, %c0_4] : memref<1x256xbf16, #tpu.memory_space<vmem>>, vector<1x256xbf16>
    %5 = vector.broadcast %4 : vector<1x256xbf16> to vector<32x256xbf16>
    %6 = arith.addf %3, %5 : vector<32x256xbf16>
    %cst_5 = arith.constant 0.000000e+00 : bf16
    %7 = vector.broadcast %cst_5 : bf16 to vector<32x256xbf16>
    %8 = arith.maximumf %6, %7 : vector<32x256xbf16>
    %c0_6 = arith.constant 0 : index
    %c0_7 = arith.constant 0 : index
    %9 = vector.load %arg4[%c0_6, %c0_7] : memref<256x256xbf16, #tpu.memory_space<vmem>>, vector<256x256xbf16>
    %cst_8 = arith.constant dense<0.000000e+00> : vector<32x256xf32>
    %10 = tpu.matmul %8, %9, %cst_8 {dimension_numbers = #tpu.dot_dimension_numbers<[1], [0], [0], [1], [0, 0, 1, 1], [], []>} : vector<32x256xbf16>, vector<256x256xbf16>, vector<32x256xf32> -> vector<32x256xf32>
    %11 = arith.truncf %10 : vector<32x256xf32> to vector<32x256xbf16>
    %c0_9 = arith.constant 0 : index
    %c0_10 = arith.constant 0 : index
    %12 = vector.load %arg5[%c0_9, %c0_10] : memref<1x256xbf16, #tpu.memory_space<vmem>>, vector<1x256xbf16>
    %13 = vector.broadcast %12 : vector<1x256xbf16> to vector<32x256xbf16>
    %14 = arith.addf %11, %13 : vector<32x256xbf16>
    %cst_11 = arith.constant 0.000000e+00 : bf16
    %15 = vector.broadcast %cst_11 : bf16 to vector<32x256xbf16>
    %16 = arith.maximumf %14, %15 : vector<32x256xbf16>
    %c0_12 = arith.constant 0 : index
    %c0_13 = arith.constant 0 : index
    %17 = vector.load %arg6[%c0_12, %c0_13] : memref<256x128xbf16, #tpu.memory_space<vmem>>, vector<256x128xbf16>
    %cst_14 = arith.constant dense<0.000000e+00> : vector<32x128xf32>
    %18 = tpu.matmul %16, %17, %cst_14 {dimension_numbers = #tpu.dot_dimension_numbers<[1], [0], [0], [1], [0, 0, 1, 1], [], []>} : vector<32x256xbf16>, vector<256x128xbf16>, vector<32x128xf32> -> vector<32x128xf32>
    %19 = arith.truncf %18 : vector<32x128xf32> to vector<32x128xbf16>
    %c0_15 = arith.constant 0 : index
    %c0_16 = arith.constant 0 : index
    %20 = vector.load %arg7[%c0_15, %c0_16] : memref<1x128xbf16, #tpu.memory_space<vmem>>, vector<1x128xbf16>
    %21 = vector.broadcast %20 : vector<1x128xbf16> to vector<32x128xbf16>
    %22 = arith.addf %19, %21 : vector<32x128xbf16>
    %cst_17 = arith.constant 0.000000e+00 : bf16
    %23 = vector.broadcast %cst_17 : bf16 to vector<32x128xbf16>
    %24 = arith.maximumf %22, %23 : vector<32x128xbf16>
    %c0_18 = arith.constant 0 : index
    %c0_19 = arith.constant 0 : index
    %25 = vector.load %arg8[%c0_18, %c0_19] : memref<32x128xbf16, #tpu.memory_space<vmem>>, vector<32x128xbf16>
    tpu.vector_store %arg8[%c0_18, %c0_19], %24 {strides = array<i32>} : memref<32x128xbf16, #tpu.memory_space<vmem>>, vector<32x128xbf16>,
    return
  }
  func.func @transform_0(%arg0: i32) -> (i32, i32) {
    %c0_i32 = arith.constant 0 : i32
    %c0_i32_0 = arith.constant 0 : i32
    return %arg0, %c0_i32 : i32, i32
  }
  func.func @transform_1(%arg0: i32) -> (i32, i32) {
    %c0_i32 = arith.constant 0 : i32
    %c0_i32_0 = arith.constant 0 : i32
    %c0_i32_1 = arith.constant 0 : i32
    return %c0_i32, %c0_i32_0 : i32, i32
  }
  func.func @transform_2(%arg0: i32) -> (i32, i32) {
    %c0_i32 = arith.constant 0 : i32
    %c0_i32_0 = arith.constant 0 : i32
    %c0_i32_1 = arith.constant 0 : i32
    return %c0_i32, %c0_i32_0 : i32, i32
  }
  func.func @transform_3(%arg0: i32) -> (i32, i32) {
    %c0_i32 = arith.constant 0 : i32
    %c0_i32_0 = arith.constant 0 : i32
    %c0_i32_1 = arith.constant 0 : i32
    return %c0_i32, %c0_i32_0 : i32, i32
  }
  func.func @transform_4(%arg0: i32) -> (i32, i32) {
    %c0_i32 = arith.constant 0 : i32
    %c0_i32_0 = arith.constant 0 : i32
    %c0_i32_1 = arith.constant 0 : i32
    return %c0_i32, %c0_i32_0 : i32, i32
  }
  func.func @transform_5(%arg0: i32) -> (i32, i32) {
    %c0_i32 = arith.constant 0 : i32
    %c0_i32_0 = arith.constant 0 : i32
    %c0_i32_1 = arith.constant 0 : i32
    return %c0_i32, %c0_i32_0 : i32, i32
  }
  func.func @transform_6(%arg0: i32) -> (i32, i32) {
    %c0_i32 = arith.constant 0 : i32
    %c0_i32_0 = arith.constant 0 : i32
    %c0_i32_1 = arith.constant 0 : i32
    return %c0_i32, %c0_i32_0 : i32, i32
  }
  func.func @transform_7(%arg0: i32) -> (i32, i32) {
    %c0_i32 = arith.constant 0 : i32
    %c0_i32_0 = arith.constant 0 : i32
    return %arg0, %c0_i32 : i32, i32
  }
}

</mosaic_0001>

<bundles_post_ra>
// kernel: user_tower.1
= control target key start
LH: loop header
LB: loop body
LE: loop exit
PB: predicated region body
PF: predicated region fallthrough
CT: control target
= control target key end

     0   :  { %s1319_s24 = smov 0   ;;  %s1567_s0 = inlined_call_operand.vmem [shape: bf16[128,128], index: 0, kind: input, shape index: {}]   ;;  %s1568_s1 = inlined_call_operand.vmem [shape: bf16[128,256], index: 1, kind: input, shape index: {}]   ;;  %s1569_s2 = inlined_call_operand.vmem [shape: bf16[1,256], index: 2, kind: input, shape index: {}]   ;;  %s1570_s3 = inlined_call_operand.vmem [shape: bf16[256,256], index: 3, kind: input, shape index: {}]   ;;  %s1571_s4 = inlined_call_operand.vmem [shape: bf16[1,256], index: 4, kind: input, shape index: {}]   ;;  %s1572_s5 = inlined_call_operand.vmem [shape: bf16[256,128], index: 5, kind: input, shape index: {}]   ;;  %s1573_s6 = inlined_call_operand.vmem [shape: bf16[1,128], index: 6, kind: input, shape index: {}]   ;;  %s1574_s7 = inlined_call_operand.vmem [shape: bf16[128,128], index: 7, kind: output, shape index: {}]  }
   0x1 LB: > { %s1058_s25 = sadd.s32 4294967295, %s1275_s24   ;;  %p1062_p0 = scmp.ge.s32.totalorder %s1275_s24, 1  ;;  %s1275_s24 = sphi %s1319_s24, %s17_s24  }
   0x2   : > { %p238_p1 = scmp.lt.s32.totalorder %s1275_s24, 5 }
   0x4   : > { %p239_p2 = pnand %p1062_p0, %p238_p1 }
   0x5   : > { %s1063_s28 = sshll.u32 (!%p239_p2), %s1058_s25, 2 }
   0x6   : > { %242 = sbr.rel (%p239_p2) target bundleno = 674 (0x2a2), region = 48  ;;  %p271_p3 = scmp.lt.s32.totalorder (!%p239_p2), %s1063_s28, 15 }
   0xb   : > { %v1179_v0 = vld [vmem:[%s1568_s1 + $0x74] ss:$8 sps:$4 sm:$0xff]   ;;  %v1181_v1 = vld [vmem:[%s1568_s1 + $0x70] ss:$8 sps:$4 sm:$0xff]   ;;  %v1277_v2 = vmov 0   ;;  %s1576_s28 = smov (!%p271_p3, %s1063_s28), 15  ;;  %v465_v63 = vlaneseq }
   0xc   : > { %427 = vmatprep.mubr.bf16.mxu0 %v1277_v2  ;;  %395 = vmatprep.subr.bf16.mxu0 %v1179_v0  ;;  %v1182_v3 = vld [vmem:[%s1568_s1 + $0x64] ss:$8 sps:$4 sm:$0xff]   ;;  %v1184_v4 = vld [vmem:[%s1568_s1 + $0x60] ss:$8 sps:$4 sm:$0xff]   ;;  %v1185_v5 = vld [vmem:[%s1568_s1 + $0x54] ss:$8 sps:$4 sm:$0xff]  }
   0xd   : > { %396 = vmatpush1.bf16.msra.mxu0 %v1181_v1  ;;  %s1064_s14 = sshll.u32 %s1576_s28, 2  ;;  %v1187_v6 = vld [vmem:[%s1568_s1 + $0x50] ss:$8 sps:$4 sm:$0xff]   ;;  %v1188_v7 = vld [vmem:[%s1568_s1 + $0x44] ss:$8 sps:$4 sm:$0xff]   ;;  %v466_v1 = vshrl.u32 %v465_v63, 7 }
   0xe   : > { %397 = vmatprep.subr.bf16.mxu0 %v1182_v3  ;;  %s1357_s21 = scalar_lea.vmem %s1567_s0, %s1064_s14  ;;  %v1190_v8 = vld [vmem:[%s1568_s1 + $0x40] ss:$8 sps:$4 sm:$0xff]   ;;  %v1191_v9 = vld [vmem:[%s1568_s1 + $0x34] ss:$8 sps:$4 sm:$0xff]   ;;  %v1207_v11 = vld [vmem:[%s1570_s3 + $0x70] ss:$8 sps:$4 sm:$0xff]   ;;  %s280_s27 = scalar_lea.vmem %s1574_s7, %s1064_s14 }
   0xf   : > { %v1205_v10 = vld [vmem:[%s1570_s3 + $0x74] ss:$8 sps:$4 sm:$0xff]   ;;  %v1208_v12 = vld [vmem:[%s1570_s3 + $0x64] ss:$8 sps:$4 sm:$0xff]   ;;  %v1193_v13 = vld [vmem:[%s1568_s1 + $0x30] ss:$8 sps:$4 sm:$0xff]  }
  0x10   : > { %690 = vmatprep.subr.bf16.mxu1 %v1205_v10  ;;  %v1194_v14 = vld [vmem:[%s1568_s1 + $0x24] ss:$8 sps:$4 sm:$0xff]   ;;  %v1210_v15 = vld [vmem:[%s1570_s3 + $0x60] ss:$8 sps:$4 sm:$0xff]   ;;  %v1211_v16 = vld [vmem:[%s1570_s3 + $0x54] ss:$8 sps:$4 sm:$0xff]  }
  0x11   : > { %398 = vmatpush1.bf16.msra.mxu0 %v1184_v4  ;;  %691 = vmatpush1.bf16.msra.mxu1 %v1207_v11  ;;  %v1196_v17 = vld [vmem:[%s1568_s1 + $0x20] ss:$8 sps:$4 sm:$0xff]   ;;  %v1197_v18 = vld [vmem:[%s1568_s1 + $0x14] ss:$8 sps:$4 sm:$0xff]   ;;  %v1213_v19 = vld [vmem:[%s1570_s3 + $0x50] ss:$8 sps:$4 sm:$0xff]  }
  0x12   : > { %399 = vmatprep.subr.bf16.mxu0 %v1185_v5  ;;  %692 = vmatprep.subr.bf16.mxu1 %v1208_v12  ;;  %v1214_v20 = vld [vmem:[%s1570_s3 + $0x44] ss:$8 sps:$4 sm:$0xff]   ;;  %v1199_v21 = vld [vmem:[%s1568_s1 + $0x10] ss:$8 sps:$4 sm:$0xff]   ;;  %v1216_v23 = vld [vmem:[%s1570_s3 + $0x40] ss:$8 sps:$4 sm:$0xff]  }
  0x13   : > { %v1200_v22 = vld [vmem:[%s1568_s1 + $0x4] ss:$8 sps:$4 sm:$0xff]   ;;  %v1217_v24 = vld [vmem:[%s1570_s3 + $0x34] ss:$8 sps:$4 sm:$0xff]   ;;  %v1202_v25 = vld [vmem:[%s1568_s1] ss:$8 sps:$4 sm:$0xff]  }
  0x14   : > { %v1219_v26 = vld [vmem:[%s1570_s3 + $0x30] ss:$8 sps:$4 sm:$0xff]   ;;  %v1203_v27 = vld [vmem:[%s1357_s21] sm:$0xff]   ;;  %v1223_v30 = vld [vmem:[%s1570_s3 + $0x14] ss:$8 sps:$4 sm:$0xff]   ;;  %v1518_v10 = vsub.s32 0, %v466_v1 }
  0x15   : > { %400 = vmatpush1.bf16.msra.mxu0 %v1187_v6  ;;  %693 = vmatpush1.bf16.msra.mxu1 %v1210_v15  ;;  %v1220_v28 = vld [vmem:[%s1570_s3 + $0x24] ss:$8 sps:$4 sm:$0xff]   ;;  %v1222_v29 = vld [vmem:[%s1570_s3 + $0x20] ss:$8 sps:$4 sm:$0xff]   ;;  %v1225_v31 = vld [vmem:[%s1570_s3 + $0x10] ss:$8 sps:$4 sm:$0xff]  }
  0x16   : > { %401 = vmatprep.subr.bf16.mxu0 %v1188_v7  ;;  %694 = vmatprep.subr.bf16.mxu1 %v1211_v16  ;;  %v1226_v32 = vld [vmem:[%s1570_s3 + $0x4] ss:$8 sps:$4 sm:$0xff]   ;;  %v1228_v34 = vld [vmem:[%s1570_s3] ss:$8 sps:$4 sm:$0xff]   ;;  %v1229_v35 = vld [vmem:[%s1570_s3 + $0xf4] ss:$8 sps:$4 sm:$0xff]  }
  0x17   : > { %v1204_v33 = vld [vmem:[%s1357_s21 + $0x8] sm:$0xff]   ;;  %v1231_v36 = vld [vmem:[%s1570_s3 + $0xf0] ss:$8 sps:$4 sm:$0xff]   ;;  %v1235_v39 = vld [vmem:[%s1570_s3 + $0xd4] ss:$8 sps:$4 sm:$0xff]  }
  0x18   : > { %v1232_v37 = vld [vmem:[%s1570_s3 + $0xe4] ss:$8 sps:$4 sm:$0xff]   ;;  %v1234_v38 = vld [vmem:[%s1570_s3 + $0xe0] ss:$8 sps:$4 sm:$0xff]   ;;  %v1237_v40 = vld [vmem:[%s1570_s3 + $0xd0] ss:$8 sps:$4 sm:$0xff]  }
  0x19   : > { %402 = vmatpush1.bf16.msra.mxu0 %v1190_v8  ;;  %695 = vmatpush1.bf16.msra.mxu1 %v1213_v19  ;;  %v1238_v41 = vld [vmem:[%s1570_s3 + $0xc4] ss:$8 sps:$4 sm:$0xff]   ;;  %v1240_v42 = vld [vmem:[%s1570_s3 + $0xc0] ss:$8 sps:$4 sm:$0xff]   ;;  %v1241_v43 = vld [vmem:[%s1570_s3 + $0xb4] ss:$8 sps:$4 sm:$0xff]  }
  0x1a   : > { %403 = vmatprep.subr.bf16.mxu0 %v1191_v9  ;;  %696 = vmatprep.subr.bf16.mxu1 %v1214_v20  ;;  %v1243_v44 = vld [vmem:[%s1570_s3 + $0xb0] ss:$8 sps:$4 sm:$0xff]   ;;  %v1244_v45 = vld [vmem:[%s1570_s3 + $0xa4] ss:$8 sps:$4 sm:$0xff]   ;;  %v1246_v46 = vld [vmem:[%s1570_s3 + $0xa0] ss:$8 sps:$4 sm:$0xff]  }
  0x1b   : > { %v1247_v47 = vld [vmem:[%s1570_s3 + $0x94] ss:$8 sps:$4 sm:$0xff]   ;;  %v1249_v48 = vld [vmem:[%s1570_s3 + $0x90] ss:$8 sps:$4 sm:$0xff]   ;;  %v1250_v49 = vld [vmem:[%s1570_s3 + $0x84] ss:$8 sps:$4 sm:$0xff]  }
  0x1c   : > { %v1252_v50 = vld [vmem:[%s1570_s3 + $0x80] ss:$8 sps:$4 sm:$0xff]   ;;  %v1253_v51 = vld [vmem:[%s1572_s5 + $0x78] sm:$0xff]   ;;  %v1255_v53 = vld [vmem:[%s1572_s5 + $0x70] sm:$0xff]   ;;  %v1278_v61 = vmov 1966171168  }
  0x1d   : > { %404 = vmatpush1.bf16.msra.mxu0 %v1193_v13  ;;  %697 = vmatpush1.bf16.msra.mxu1 %v1216_v23  ;;  %v1254_v52 = vld [vmem:[%s1572_s5 + $0x38] sm:$0xff]   ;;  %v1256_v54 = vld [vmem:[%s1572_s5 + $0x30] sm:$0xff]   ;;  %v1257_v55 = vld [vmem:[%s1572_s5 + $0x68] sm:$0xff]   ;;  %v463_v62 = vunpack.c.l.s4 %v1278_v61 }
  0x1e   : > { %405 = vmatprep.subr.bf16.mxu0 %v1194_v14  ;;  %698 = vmatprep.subr.bf16.mxu1 %v1217_v24  ;;  %v1258_v56 = vld [vmem:[%s1572_s5 + $0x28] sm:$0xff]   ;;  %v1259_v57 = vld [vmem:[%s1572_s5 + $0x60] sm:$0xff]   ;;  %v1261_v59 = vld [vmem:[%s1572_s5 + $0x58] sm:$0xff]  }
  0x1f   : > { %v1260_v58 = vld [vmem:[%s1572_s5 + $0x20] sm:$0xff]   ;;  %v1262_v60 = vld [vmem:[%s1572_s5 + $0x18] sm:$0xff]   ;;  %v464_v0 = vunpack.c.0.s8 %v463_v62 }
  0x20   : > { %v1085_v3 = vld.sshfl [vmem:[%s1569_s2] sm:$0x11 pattern:$0x75316420] }
  0x21   : > { %406 = vmatpush1.bf16.msra.mxu0 %v1196_v17  ;;  %699 = vmatpush1.bf16.msra.mxu1 %v1219_v26  ;;  %v467_v4 = vsub.s32 %v464_v0, %v466_v1  ;;  %v461_v5 = vcombine.high %v1085_v3, %v1085_v3 }
  0x22   : > { %407 = vmatprep.subr.bf16.mxu0 %v1197_v18  ;;  %700 = vmatprep.subr.bf16.mxu1 %v1220_v28 }
  0x23   : > { %v468_v6 = vrot.slane %v1085_v3, %v467_v4  ;;  %v475_v7 = vrot.slane %v461_v5, %v467_v4  ;;  %v972_v5 = vld [vmem:[%s1573_s6] sm:$0x1] }
  0x25   : > { %408 = vmatpush1.bf16.msra.mxu0 %v1199_v21  ;;  %701 = vmatpush1.bf16.msra.mxu1 %v1222_v29  ;;  %v477_v9 = vpack.i.b16 %v468_v6, %v468_v6  ;;  %v484_v11 = vpack.i.b16 %v475_v7, %v475_v7  ;;  %v974_v7 = vpack.i.b16 %v972_v5, %v972_v5 }
  0x26   : > { %409 = vmatprep.subr.bf16.mxu0 %v1200_v22  ;;  %702 = vmatprep.subr.bf16.mxu1 %v1223_v30 }
  0x27   : > { %v482_v14 = vrot.slane %v477_v9, %v1518_v10  ;;  %v489_v16 = vrot.slane %v484_v11, %v1518_v10 }
  0x29   : > { %410 = vmatpush1.bf16.msra.mxu0 %v1202_v25  ;;  %703 = vmatpush1.bf16.msra.mxu1 %v1225_v31 }
  0x2a   : > { %704 = vmatprep.subr.bf16.mxu1 %v1226_v32  ;;  %1141 = vmatprep.subr.bf16.mxu0 %v1253_v51 }
  0x2c   : > { %428 = vmatmul.mubr.bf16.vlgmr.msra.gmra.mxu0 %v1203_v27 }
  0x2d   : > { %437 = vmatprep.mubr.bf16.mxu0 %v1277_v2  ;;  %705 = vmatpush1.bf16.msra.mxu1 %v1228_v34  ;;  %v1264_v34 = vld [vmem:[%s1572_s5 + $0x10] sm:$0xff]  }
  0x2e   : > { %706 = vmatprep.subr.bf16.mxu1 %v1229_v35  ;;  %1142 = vmatpush3.bf16.msra.mxu0 %v1254_v52  ;;  %v1265_v35 = vld [vmem:[%s1572_s5 + $0x48] sm:$0xff]  }
  0x2f   : > { %1143 = vmatprep.subr.bf16.mxu0 %v1255_v53 }
  0x31   : > { %707 = vmatpush2.bf16.msra.mxu1 %v1231_v36  ;;  %v1266_v36 = vld [vmem:[%s1572_s5 + $0x8] sm:$0xff]  }
  0x32   : > { %708 = vmatprep.subr.bf16.mxu1 %v1232_v37  ;;  %1144 = vmatpush3.bf16.msra.mxu0 %v1256_v54  ;;  %v1267_v37 = vld [vmem:[%s1572_s5 + $0x40] sm:$0xff]  }
  0x33   : > { %1145 = vmatprep.subr.bf16.mxu0 %v1257_v55 }
  0x34   : > { %438 = vmatmul.mubr.bf16.gmra.mxu0 %v1204_v33  ;;  %v1263_v33 = vld [vmem:[%s1572_s5 + $0x50] sm:$0xff]  }
  0x35   : > { %709 = vmatpush2.bf16.msra.mxu1 %v1234_v38  ;;  %v1268_v38 = vld [vmem:[%s1572_s5] sm:$0xff]  }
  0x36   : > { %710 = vmatprep.subr.bf16.mxu1 %v1235_v39  ;;  %1146 = vmatpush3.bf16.msra.mxu0 %v1258_v56  ;;  %v1118_v39 = vld.sshfl [vmem:[%s1571_s4] sm:$0x11 pattern:$0x75316420] }
  0x37   : > { %1147 = vmatprep.subr.bf16.mxu0 %v1259_v57 }
  0x39   : > { %711 = vmatpush2.bf16.msra.mxu1 %v1237_v40  ;;  %v756_v40 = vcombine.high %v1118_v39, %v1118_v39 }
  0x3a   : > { %712 = vmatprep.subr.bf16.mxu1 %v1238_v41  ;;  %1148 = vmatpush3.bf16.msra.mxu0 %v1260_v58  ;;  %v763_v41 = vrot.slane %v1118_v39, %v467_v4 }
  0x3b   : > { %1149 = vmatprep.subr.bf16.mxu0 %v1261_v59 }
  0x3d   : > { %713 = vmatpush2.bf16.msra.mxu1 %v1240_v42  ;;  %v770_v42 = vrot.slane %v756_v40, %v467_v4 }
  0x3e   : > { %714 = vmatprep.subr.bf16.mxu1 %v1241_v43  ;;  %1150 = vmatpush3.bf16.msra.mxu0 %v1262_v60 }
  0x3f   : > { %1151 = vmatprep.subr.bf16.mxu0 %v1263_v33 }
  0x41   : > { %715 = vmatpush2.bf16.msra.mxu1 %v1243_v44  ;;  %v772_v44 = vpack.i.b16 %v763_v41, %v763_v41 }
  0x42   : > { %716 = vmatprep.subr.bf16.mxu1 %v1244_v45  ;;  %1152 = vmatpush3.bf16.msra.mxu0 %v1264_v34  ;;  %v779_v45 = vpack.i.b16 %v770_v42, %v770_v42 }
  0x43   : > { %1153 = vmatprep.subr.bf16.mxu0 %v1265_v35 }
  0x45   : > { %717 = vmatpush2.bf16.msra.mxu1 %v1246_v46 }
  0x46   : > { %718 = vmatprep.subr.bf16.mxu1 %v1247_v47  ;;  %1154 = vmatpush3.bf16.msra.mxu0 %v1266_v36 }
  0x47   : > { %1155 = vmatprep.subr.bf16.mxu0 %v1267_v37 }
  0x49   : > { %719 = vmatpush2.bf16.msra.mxu1 %v1249_v48  ;;  %v777_v48 = vrot.slane %v772_v44, %v1518_v10 }
  0x4a   : > { %720 = vmatprep.subr.bf16.mxu1 %v1250_v49  ;;  %1156 = vmatpush3.bf16.msra.mxu0 %v1268_v38 }
  0x4d   : > { %721 = vmatpush2.bf16.msra.mxu1 %v1252_v50  ;;  %v784_v50 = vrot.slane %v779_v45, %v1518_v10 }
  0xec   : > { %v429_v8 = vpop.f32.mrf.mxu0 }
  0xee   : > { %v431_v12 = vpop.f32.mrf.mxu0 }
  0xf0   : > { %v433_v13 = vpop.f32.mrf.mxu0 }
  0xf1   : > { %v448_v15 = vpack.c.bf16 %v433_v13, %v429_v8  ;;  %v979_v13 = vrot.slane %v974_v7, %v1518_v10 }
  0xf2   : > { %v435_v17 = vpop.f32.mrf.mxu0 }
  0xf3   : > { %v449_v18 = vpack.c.bf16 %v435_v17, %v431_v12  ;;  %v490_v19 = vadd.bf16 %v482_v14, %v448_v15 }
  0xf4   : > { %v439_v20 = vpop.f32.mrf.mxu0 }
  0xf5   : > { %v491_v21 = vadd.bf16 %v489_v16, %v449_v18  ;;  %v494_v25 = vmax.bf16 %v1277_v2, %v490_v19 }
  0xf6   : > { %v441_v22 = vpop.f32.mrf.mxu0 }
  0xf7   : > { %v495_v23 = vmax.bf16 %v1277_v2, %v491_v21 }
  0xf8   : > { %v443_v24 = vpop.f32.mrf.mxu0 }
  0xf9   : > { %v450_v26 = vpack.c.bf16 %v443_v24, %v439_v20  ;;  %722 = vmatprep.mubr.bf16.mxu1 %v495_v23 }
  0xfa   : > { %v445_v27 = vpop.f32.mrf.mxu0  ;;  %723 = vmatmul.mubr.bf16.vlgmr.msra.gmra.mxu1 %v494_v25 }
  0xfb   : > { %v451_v28 = vpack.c.bf16 %v445_v27, %v441_v22  ;;  %v492_v29 = vadd.bf16 %v482_v14, %v450_v26 }
  0xfd   : > { %v493_v30 = vadd.bf16 %v489_v16, %v451_v28  ;;  %v496_v32 = vmax.bf16 %v1277_v2, %v492_v29 }
  0xff   : > { %v497_v31 = vmax.bf16 %v1277_v2, %v493_v30 }
 0x101   : > { %732 = vmatprep.mubr.bf16.mxu1 %v497_v31 }
 0x102   : > { %733 = vmatmul.mubr.bf16.gmra.mxu1 %v496_v32 }
 0x1ba   : > { %v724_v43 = vpop.f32.mrf.mxu1 }
 0x1bc   : > { %v726_v46 = vpop.f32.mrf.mxu1 }
 0x1be   : > { %v728_v47 = vpop.f32.mrf.mxu1 }
 0x1bf   : > { %v743_v49 = vpack.c.bf16 %v728_v47, %v724_v43 }
 0x1c0   : > { %v730_v51 = vpop.f32.mrf.mxu1 }
 0x1c1   : > { %v744_v52 = vpack.c.bf16 %v730_v51, %v726_v46  ;;  %v785_v53 = vadd.bf16 %v777_v48, %v743_v49 }
 0x1c2   : > { %v734_v54 = vpop.f32.mrf.mxu1 }
 0x1c3   : > { %v786_v55 = vadd.bf16 %v784_v50, %v744_v52  ;;  %v789_v58 = vmax.bf16 %v1277_v2, %v785_v53 }
 0x1c4   : > { %v736_v56 = vpop.f32.mrf.mxu1 }
 0x1c5   : > { %v790_v57 = vmax.bf16 %v1277_v2, %v786_v55 }
 0x1c6   : > { %v738_v59 = vpop.f32.mrf.mxu1 }
 0x1c7   : > { %v745_v60 = vpack.c.bf16 %v738_v59, %v734_v54  ;;  %953 = vmatprep.mubr.bf16.mxu0 %v790_v57 }
 0x1c8   : > { %v740_v61 = vpop.f32.mrf.mxu1  ;;  %954 = vmatmul.mubr.bf16.vlgmr.msra.gmra.mxu0 %v789_v58 }
 0x1c9   : > { %v746_v62 = vpack.c.bf16 %v740_v61, %v736_v56  ;;  %v787_v63 = vadd.bf16 %v777_v48, %v745_v60 }
 0x1cb   : > { %v788_v0 = vadd.bf16 %v784_v50, %v746_v62  ;;  %v791_v3 = vmax.bf16 %v1277_v2, %v787_v63 }
 0x1cd   : > { %v792_v1 = vmax.bf16 %v1277_v2, %v788_v0 }
 0x1cf   : > { %961 = vmatprep.mubr.bf16.mxu0 %v792_v1 }
 0x1d0   : > { %962 = vmatmul.mubr.bf16.gmra.mxu0 %v791_v3 }
 0x288   : > { %v1157_v4 = vpop.f32.mrf.mxu0 }
 0x28a   : > { %v1158_v6 = vpop.f32.mrf.mxu0 }
 0x28b   : > { %v1159_v11 = vadd.f32 %v1158_v6, %v1157_v4 }
 0x28c   : > { %v1160_v8 = vpop.f32.mrf.mxu0 }
 0x28e   : > { %v1161_v9 = vpop.f32.mrf.mxu0 }
 0x28f   : > { %v1162_v12 = vadd.f32 %v1161_v9, %v1160_v8 }
 0x290   : > { %v1163_v14 = vpop.f32.mrf.mxu0 }
 0x291   : > { %v970_v15 = vpack.c.bf16 %v1162_v12, %v1159_v11 }
 0x292   : > { %v1164_v16 = vpop.f32.mrf.mxu0 }
 0x293   : > { %v980_v17 = vadd.bf16 %v979_v13, %v970_v15  ;;  %v1165_v23 = vadd.f32 %v1164_v16, %v1163_v14 }
 0x294   : > { %v1166_v18 = vpop.f32.mrf.mxu0 }
 0x295   : > { %v982_v19 = vmax.bf16 %v1277_v2, %v980_v17 }
 0x296   : > { %v1167_v20 = vpop.f32.mrf.mxu0 }
 0x297   : > { %v1135_v21 = vcombine.low %v982_v19, %v982_v19  ;;  %v1136_v22 = vcombine.high %v982_v19, %v982_v19  ;;  %v1168_v24 = vadd.f32 %v1167_v20, %v1166_v18 }
 0x299   : > { %998 = vst [vmem:[%s280_s27] sm:$0xf] %v1135_v21  ;;  %999 = vst [vmem:[%s280_s27 + $0x4] sm:$0xf] %v1136_v22  ;;  %v971_v10 = vpack.c.bf16 %v1168_v24, %v1165_v23 }
 0x29b   : > { %v981_v25 = vadd.bf16 %v979_v13, %v971_v10 }
 0x29d   : > { %v983_v26 = vmax.bf16 %v1277_v2, %v981_v25 }
 0x29f   : > { %v1137_v27 = vcombine.low %v983_v26, %v983_v26  ;;  %v1138_v28 = vcombine.high %v983_v26, %v983_v26 }
 0x2a1   : > { %1000 = vst [vmem:[%s280_s27 + $0x8] sm:$0xf] %v1137_v27  ;;  %1001 = vst [vmem:[%s280_s27 + $0xc] sm:$0xf] %v1138_v28 }
 0x2a2 PF: > { %s17_s24 = sadd.s32 1, %s1275_s24  }
 0x2a3   : > { %p14_p4 = scmp.ge.s32.totalorder %s17_s24, 6  }
 0x2a5   :  { %16 = sbr.rel (!%p14_p4) target bundleno = 1 (0x1), region = 78 }

</bundles_post_ra>
